<compile_context>
chip_gen: v5e
topology: v5e:2x2
jax: 0.10.0
libtpu: 0.0.40
codegen_flags: <defaults>
</compile_context>

<pallas_src>
import numpy as np
import jax
import jax.numpy as jnp
from jax.experimental import pallas as pl
from jax.experimental.pallas import tpu as pltpu


def _round_up(x, m):
    return (x + m - 1) // m * m


# ----------------------------------------------------------------- kernels --

def _matmul_bias_kernel(x_ref, w_ref, b_ref, o_ref):
    # (TR, K)bf16 @ (K, N)bf16 -> f32 accumulate, + f32 bias.
    o_ref[...] = jnp.dot(x_ref[...], w_ref[...],
                         preferred_element_type=jnp.float32) + b_ref[...]


def _gru_recurrence_kernel(gi_ref, h0_ref, whh_ref, bhh_ref, hs_ref, h_scr):
    # grid = (batch_tiles, seq_len).  Only the H->H recurrent matmul lives here.
    t = pl.program_id(1)

    @pl.when(t == 0)
    def _init():
        h_scr[...] = h0_ref[...]

    h_prev = h_scr[...]                       # (TB, H) f32 carry
    gi = gi_ref[0]                            # (TB, 3H) f32 = x_t @ W_ih + b_ih (hoisted)
    gh = jnp.dot(h_prev.astype(jnp.bfloat16), whh_ref[...],
                 preferred_element_type=jnp.float32) + bhh_ref[...]   # (TB, 3H)

    H = h_prev.shape[-1]
    r = jax.nn.sigmoid(gi[:, :H] + gh[:, :H])
    z = jax.nn.sigmoid(gi[:, H:2 * H] + gh[:, H:2 * H])
    n = jnp.tanh(gi[:, 2 * H:] + r * gh[:, 2 * H:])
    h = (1.0 - z) * n + z * h_prev

    h_scr[...] = h
    hs_ref[0] = h


def _voc_argmax_kernel(h_ref, wv_ref, bv_ref, logits_ref, comm_ref, m_scr, a_scr):
    # grid = (row_tiles, vocab_tiles); vocab axis innermost with a running argmax.
    j = pl.program_id(1)

    @pl.when(j == 0)
    def _init():
        m_scr[...] = jnp.full(m_scr.shape, -jnp.inf, m_scr.dtype)
        a_scr[...] = jnp.zeros(a_scr.shape, a_scr.dtype)

    logits = jnp.dot(h_ref[...].astype(jnp.bfloat16), wv_ref[...],
                     preferred_element_type=jnp.float32) + bv_ref[...]   # (TR, TV)
    logits_ref[...] = logits

    TR, TV = logits.shape
    lane = jax.lax.broadcasted_iota(jnp.int32, (TR, TV), 1)
    blk_max = jnp.max(logits, axis=-1, keepdims=True)                    # (TR, 1)
    blk_arg = jnp.min(jnp.where(logits == blk_max, lane, TV),
                      axis=-1, keepdims=True) + j * TV                   # first max in block
    better = blk_max > m_scr[...]           # strict > keeps the FIRST global maximum
    a_scr[...] = jnp.where(better, blk_arg, a_scr[...])
    m_scr[...] = jnp.where(better, blk_max, m_scr[...])

    @pl.when(j == pl.num_programs(1) - 1)
    def _flush():
        comm_ref[...] = a_scr[...]          # one store per row tile (not per timestep)


# ----------------------------------------------------------------- wrapper --

def prepare_speaker_params(params):
    """One-time layout prep: concat gates, cast matmul operands to bf16, pad vocab."""
    emb = params["emb"]                                    # (V, D_emb)
    V, D_emb = emb.shape
    H = params["whh"].shape[-1]
    wih = jnp.transpose(params["wih"], (1, 0, 2)).reshape(D_emb, 3 * H)   # [r|z|n]
    whh = jnp.transpose(params["whh"], (1, 0, 2)).reshape(H, 3 * H)
    bih = params["bih"].reshape(1, 3 * H)
    bhh = params["bhh"].reshape(1, 3 * H)
    wv, bv = params["wv"], params["bv"]                    # (H, V), (1, V)

    TV = min(512, _round_up(V, 128))
    Vpad = _round_up(V, TV)
    if Vpad != V:
        wv = jnp.pad(wv, ((0, 0), (0, Vpad - V)))
        bv = jnp.pad(bv, ((0, 0), (0, Vpad - V)), constant_values=-1e30)  # never wins argmax

    return dict(
        emb=emb.astype(jnp.bfloat16),
        wih=wih.astype(jnp.bfloat16), bih=bih.astype(jnp.float32),
        whh=whh.astype(jnp.bfloat16), bhh=bhh.astype(jnp.float32),
        wv=wv.astype(jnp.bfloat16), bv=bv.astype(jnp.float32),
        V=V, TV=TV,
    )


def speaker_forward(h_img, caps_in, caps_in_lens, p):
    """Speaker.forward (argmax path).

    Returns (logits_pad, mask_tb, comm_label):
      logits_pad : (S, B, V) time-major padded logits (hid_to_voc of GRU outputs)
      mask_tb    : (S, B) bool validity mask; packed logits == logits_pad[mask_tb]
      comm_label : (B, S) int32 argmax labels, zeroed outside the length mask
    """
    B, S = caps_in.shape
    H = h_img.shape[1]
    V, TV = p["V"], p["TV"]
    D_emb = p["emb"].shape[1]
    H3 = 3 * H
    Vpad = p["wv"].shape[1]

    Bpad = _round_up(B, 8)                                   # fill f32 sublanes
    n_bt = 2 if (Bpad >= 16 and Bpad % 16 == 0) else 1       # v7x: parallel batch shards
    TB = Bpad // n_bt

    # --- embedding lookup (+ identity dropout, eval semantics): plain JAX glue
    x = p["emb"][caps_in]                                    # (B, S, D_emb) bf16
    x = jnp.transpose(x, (1, 0, 2))                          # (S, B, D_emb) time-major
    h0 = h_img.astype(jnp.float32)
    if Bpad != B:
        x = jnp.pad(x, ((0, 0), (0, Bpad - B), (0, 0)))
        h0 = jnp.pad(h0, ((0, Bpad - B), (0, 0)))

    ROWS = S * Bpad
    TR = min(256, ROWS)                                      # row tile for batched matmuls
    ROWS_pad = _round_up(ROWS, TR)

    # --- (1) hoisted input projection: x_t @ W_ih + b_ih for ALL timesteps at once
    x_flat = x.reshape(ROWS, D_emb)
    if ROWS_pad != ROWS:
        x_flat = jnp.pad(x_flat, ((0, ROWS_pad - ROWS), (0, 0)))
    gi_flat = pl.pallas_call(
        _matmul_bias_kernel,
        out_shape=jax.ShapeDtypeStruct((ROWS_pad, H3), jnp.float32),
        grid_spec=pltpu.PrefetchScalarGridSpec(
            num_scalar_prefetch=0,
            grid=(ROWS_pad // TR,),
            in_specs=[pl.BlockSpec((TR, D_emb), lambda i: (i, 0)),
                      pl.BlockSpec((D_emb, H3), lambda i: (0, 0)),
                      pl.BlockSpec((1, H3), lambda i: (0, 0))],
            out_specs=pl.BlockSpec((TR, H3), lambda i: (i, 0)),
        ),
        compiler_params=pltpu.CompilerParams(dimension_semantics=("parallel",)),
    )(x_flat, p["wih"], p["bih"])
    gi = gi_flat[:ROWS].reshape(S, Bpad, H3)

    # --- (2) sequential GRU recurrence (only the H->H matmul per step)
    hs = pl.pallas_call(
        _gru_recurrence_kernel,
        out_shape=jax.ShapeDtypeStruct((S, Bpad, H), jnp.float32),
        grid_spec=pltpu.PrefetchScalarGridSpec(
            num_scalar_prefetch=0,
            grid=(n_bt, S),
            in_specs=[pl.BlockSpec((1, TB, H3), lambda ib, t: (t, ib, 0)),
                      pl.BlockSpec((TB, H), lambda ib, t: (ib, 0)),
                      pl.BlockSpec((H, H3), lambda ib, t: (0, 0)),
                      pl.BlockSpec((1, H3), lambda ib, t: (0, 0))],
            out_specs=pl.BlockSpec((1, TB, H), lambda ib, t: (t, ib, 0)),
            scratch_shapes=[pltpu.VMEM((TB, H), jnp.float32)],
        ),
        compiler_params=pltpu.CompilerParams(
            dimension_semantics=("parallel", "arbitrary")),
    )(gi, h0, p["whh"], p["bhh"])

    # --- (3) hoisted vocab projection + fused running argmax, vocab-tiled
    hs_flat = hs.reshape(ROWS, H)
    if ROWS_pad != ROWS:
        hs_flat = jnp.pad(hs_flat, ((0, ROWS_pad - ROWS), (0, 0)))
    logits_flat, comm_flat = pl.pallas_call(
        _voc_argmax_kernel,
        out_shape=(jax.ShapeDtypeStruct((ROWS_pad, Vpad), jnp.float32),
                   jax.ShapeDtypeStruct((ROWS_pad, 1), jnp.int32)),
        grid_spec=pltpu.PrefetchScalarGridSpec(
            num_scalar_prefetch=0,
            grid=(ROWS_pad // TR, Vpad // TV),
            in_specs=[pl.BlockSpec((TR, H), lambda i, j: (i, 0)),
                      pl.BlockSpec((H, TV), lambda i, j: (0, j)),
                      pl.BlockSpec((1, TV), lambda i, j: (0, j))],
            out_specs=[pl.BlockSpec((TR, TV), lambda i, j: (i, j)),
                       pl.BlockSpec((TR, 1), lambda i, j: (i, 0))],
            scratch_shapes=[pltpu.VMEM((TR, 1), jnp.float32),
                            pltpu.VMEM((TR, 1), jnp.int32)],
        ),
        compiler_params=pltpu.CompilerParams(
            dimension_semantics=("parallel", "arbitrary")),
    )(hs_flat, p["wv"], p["bv"])

    logits_pad = logits_flat[:ROWS, :V].reshape(S, Bpad, V)[:, :B, :]   # (S, B, V)
    comm = comm_flat[:ROWS, 0].reshape(S, Bpad)[:, :B]                  # (S, B)

    lens = jnp.asarray(caps_in_lens, dtype=jnp.int32)
    mask_bs = jnp.arange(S, dtype=jnp.int32)[None, :] < lens[:, None]   # (B, S)
    comm_label = jnp.transpose(comm) * mask_bs.astype(jnp.int32)        # (B, S)
    mask_tb = jnp.transpose(mask_bs)                                    # (S, B)
    # packed logits (== hid_to_voc(pack_padded_sequence(...).data)) are logits_pad[mask_tb]
    return logits_pad, mask_tb, comm_label


# --------------------------------------------------------------- reference --

def _ref_forward(h_img, caps_in, p):
    """Pure-JAX reference with the same bf16-operand / f32-accumulate numerics."""
    H = h_img.shape[1]
    V = p["V"]
    xs = jnp.transpose(p["emb"][caps_in], (1, 0, 2))                 # (S, B, D) bf16
    gi = jnp.dot(xs, p["wih"], preferred_element_type=jnp.float32) + p["bih"]

    def step(h, gi_t):
        gh = jnp.dot(h.astype(jnp.bfloat16), p["whh"],
                     preferred_element_type=jnp.float32) + p["bhh"]
        r = jax.nn.sigmoid(gi_t[:, :H] + gh[:, :H])
        z = jax.nn.sigmoid(gi_t[:, H:2 * H] + gh[:, H:2 * H])
        n = jnp.tanh(gi_t[:, 2 * H:] + r * gh[:, 2 * H:])
        h = (1.0 - z) * n + z * h
        return h, h

    _, hs = jax.lax.scan(step, h_img.astype(jnp.float32), gi)        # (S, B, H)
    logits = jnp.dot(hs.astype(jnp.bfloat16), p["wv"],
                     preferred_element_type=jnp.float32) + p["bv"]
    return logits[..., :V]                                           # (S, B, V)


if __name__ == "__main__":
    B, S = 4, 8
    D_emb, D_hid = 32, 32
    V = 128

    key = jax.random.PRNGKey(0)
    k = jax.random.split(key, 10)

    emb = jax.random.normal(k[0], (V, D_emb), jnp.float32) * 0.1
    emb = emb.at[0].set(0.0)                       # padding_idx=0
    params = dict(
        emb=emb,
        wih=jax.random.normal(k[1], (3, D_emb, D_hid), jnp.float32) * 0.1,
        whh=jax.random.normal(k[2], (3, D_hid, D_hid), jnp.float32) * 0.1,
        bih=jax.random.normal(k[3], (3, 1, D_hid), jnp.float32) * 0.1,
        bhh=jax.random.normal(k[4], (3, 1, D_hid), jnp.float32) * 0.1,
        wv=jax.random.normal(k[5], (D_hid, V), jnp.float32) * 0.1,
        bv=jax.random.normal(k[6], (1, V), jnp.float32) * 0.1,
    )
    p = prepare_speaker_params(params)

    h_img = jax.random.normal(k[7], (B, D_hid), jnp.float32)
    caps_in_lens = jnp.array([8, 7, 5, 3], dtype=jnp.int32)      # sorted descending
    caps_in = jax.random.randint(k[8], (B, S), 1, V, dtype=jnp.int32)
    valid = jnp.arange(S, dtype=jnp.int32)[None, :] < caps_in_lens[:, None]
    caps_in = jnp.where(valid, caps_in, 0)                       # pad token = 0

    logits_pad, mask_tb, comm_label = speaker_forward(h_img, caps_in, caps_in_lens, p)
    jax.block_until_ready((logits_pad, mask_tb, comm_label))

    # --- checks
    ref_logits = _ref_forward(h_img, caps_in, p)
    assert logits_pad.shape == (S, B, V)
    assert comm_label.shape == (B, S)
    np.testing.assert_allclose(np.asarray(logits_pad), np.asarray(ref_logits),
                               rtol=1e-2, atol=1e-2)

    # comm_label must equal the (masked) first-max argmax of the kernel's own logits.
    arg = jnp.transpose(jnp.argmax(logits_pad, axis=-1).astype(jnp.int32))  # (B, S)
    arg = arg * valid.astype(jnp.int32)
    np.testing.assert_array_equal(np.asarray(comm_label), np.asarray(arg))
    assert np.all(np.asarray(comm_label)[~np.asarray(valid)] == 0)

    # packed logits view (== hid_to_voc(pack_padded_sequence(...).data)), host-side check.
    packed = np.asarray(logits_pad)[np.asarray(mask_tb)]
    assert packed.shape == (int(np.asarray(caps_in_lens).sum()), V)

    print("KERNEL_OK")
</pallas_src>

<mosaic_0001>
module attributes {stable_mosaic.version = 11 : i64} {
  func.func @_matmul_bias_kernel(%arg0: i32, %arg1: memref<64x32xbf16, #tpu.memory_space<vmem>>, %arg2: memref<32x96xbf16, #tpu.memory_space<vmem>>, %arg3: memref<1x96xf32, #tpu.memory_space<vmem>>, %arg4: memref<64x96xf32, #tpu.memory_space<vmem>>) attributes {dimension_semantics = [#tpu.dimension_semantics<parallel>], iteration_bounds = array<i64: 1>, scalar_prefetch = 0 : i64, scratch_operands = 0 : i64, tpu.core_type = #tpu.core_type<tc>, window_params = [{transform_indices = @transform_0, window_bounds = array<i64: 64, 32>}, {pipeline_mode = #tpu.pipeline_mode<synchronous>, transform_indices = @transform_1, window_bounds = array<i64: 32, 96>}, {pipeline_mode = #tpu.pipeline_mode<synchronous>, transform_indices = @transform_2, window_bounds = array<i64: 1, 96>}, {transform_indices = @transform_3, window_bounds = array<i64: 64, 96>}]} {
    %c0 = arith.constant 0 : index
    %c0_0 = arith.constant 0 : index
    %0 = vector.load %arg1[%c0, %c0_0] : memref<64x32xbf16, #tpu.memory_space<vmem>>, vector<64x32xbf16>
    %c0_1 = arith.constant 0 : index
    %c0_2 = arith.constant 0 : index
    %1 = vector.load %arg2[%c0_1, %c0_2] : memref<32x96xbf16, #tpu.memory_space<vmem>>, vector<32x96xbf16>
    %cst = arith.constant dense<0.000000e+00> : vector<64x96xf32>
    %2 = tpu.matmul %0, %1, %cst {dimension_numbers = #tpu.dot_dimension_numbers<[1], [0], [0], [1], [0, 0, 1, 1], [], []>} : vector<64x32xbf16>, vector<32x96xbf16>, vector<64x96xf32> -> vector<64x96xf32>
    %c0_3 = arith.constant 0 : index
    %c0_4 = arith.constant 0 : index
    %3 = vector.load %arg3[%c0_3, %c0_4] : memref<1x96xf32, #tpu.memory_space<vmem>>, vector<1x96xf32>
    %4 = vector.broadcast %3 : vector<1x96xf32> to vector<64x96xf32>
    %5 = arith.addf %2, %4 : vector<64x96xf32>
    %c0_5 = arith.constant 0 : index
    %c0_6 = arith.constant 0 : index
    %6 = vector.load %arg4[%c0_5, %c0_6] : memref<64x96xf32, #tpu.memory_space<vmem>>, vector<64x96xf32>
    tpu.vector_store %arg4[%c0_5, %c0_6], %5 {strides = array<i32>} : memref<64x96xf32, #tpu.memory_space<vmem>>, vector<64x96xf32>,
    return
  }
  func.func @transform_0(%arg0: i32) -> (i32, i32) {
    %c0_i32 = arith.constant 0 : i32
    %c0_i32_0 = arith.constant 0 : i32
    return %arg0, %c0_i32 : i32, i32
  }
  func.func @transform_1(%arg0: i32) -> (i32, i32) {
    %c0_i32 = arith.constant 0 : i32
    %c0_i32_0 = arith.constant 0 : i32
    %c0_i32_1 = arith.constant 0 : i32
    return %c0_i32, %c0_i32_0 : i32, i32
  }
  func.func @transform_2(%arg0: i32) -> (i32, i32) {
    %c0_i32 = arith.constant 0 : i32
    %c0_i32_0 = arith.constant 0 : i32
    %c0_i32_1 = arith.constant 0 : i32
    return %c0_i32, %c0_i32_0 : i32, i32
  }
  func.func @transform_3(%arg0: i32) -> (i32, i32) {
    %c0_i32 = arith.constant 0 : i32
    %c0_i32_0 = arith.constant 0 : i32
    return %arg0, %c0_i32 : i32, i32
  }
}

</mosaic_0001>

<bundles_post_ra>
// kernel: tpu_custom_call.1
= control target key start
LH: loop header
LB: loop body
LE: loop exit
PB: predicated region body
PF: predicated region fallthrough
CT: control target
= control target key end

     0   :  { %s258_s0 = inlined_call_operand.vmem [shape: bf16[64,32], index: 0, kind: input, shape index: {}]   ;;  %s259_s1 = inlined_call_operand.vmem [shape: bf16[32,96], index: 1, kind: input, shape index: {}]   ;;  %s260_s2 = inlined_call_operand.vmem [shape: f32[1,96], index: 2, kind: input, shape index: {}]   ;;  %s261_s3 = inlined_call_operand.hbm [shape: f32[64,96], index: 3, kind: output, shape index: {}]  }
   0x1   :  { %v166_v0 = vld [vmem:[%s259_s1 + $0x8] sm:$0xff]  ;;  %v165_v1 = vld [vmem:[%s259_s1] sm:$0xff] }
   0x2   :  { %83 = vmatpush.bf16.msra.mxu0 %v166_v0  ;;  %167 = vmatpush.bf16.msra.mxu1 %v166_v0 }
   0x3   :  { %8 = vsyncpa [#allocation3], 0  ;;  %168 = vmatpush.bf16.msra.mxu2 %v166_v0  ;;  %169 = vmatpush.bf16.msra.mxu3 %v166_v0  ;;  %v161_v2 = vld [vmem:[%s258_s0] sm:$0xff]  ;;  %v162_v3 = vld [vmem:[%s258_s0 + $0x8] sm:$0xff]  ;;  %vm64_vm0 = vcmask 261120   ;;  %vm106_vm1 = vcmask 785408  }
   0x4   :  { %v163_v4 = vld [vmem:[%s258_s0 + $0x10] sm:$0xff]  ;;  %v164_v5 = vld [vmem:[%s258_s0 + $0x18] sm:$0xff]  ;;  %v176_v6 = vld [vmem:[%s260_s2] ss:$0 sm:$0xff]  ;;  %s203_s0 = smov [#allocation2]   ;;  %s121_s27 = sshll.u32 %s261_s3, 4  ;;  %s122_s27 = int_to_ptr.hbm [resolvable:$true] %s121_s27 }
   0x5   :  { %s119_s2 = sshll.u32 %s203_s0, 4  ;;  %s204_s28 = smov 128   ;;  %s120_s2 = int_to_ptr.vmem [resolvable:$true] %s119_s2 }
   0x6   :  { %84 = vmatpush.bf16.msra.mxu0 %v165_v1  ;;  %170 = vmatpush.bf16.msra.mxu1 %v165_v1  ;;  %s205_s29 = smov 8  }
   0x7   :  { %171 = vmatpush.bf16.msra.mxu2 %v165_v1  ;;  %172 = vmatpush.bf16.msra.mxu3 %v165_v1 }
   0x9   :  { %157 = vmatmul.msk.bf16.vlgmr.msra.gmra.mxu0 %vm64_vm0, %v161_v2  ;;  %158 = vmatmul.msk.bf16.vlgmr.msra.gmra.mxu1 %vm64_vm0, %v162_v3 }
   0xa   :  { %159 = vmatmul.msk.bf16.vlgmr.msra.gmra.mxu2 %vm64_vm0, %v163_v4  ;;  %160 = vmatmul.msk.bf16.vlgmr.msra.gmra.mxu3 %vm64_vm0, %v164_v5 }
  0x86   :  { %v86_v7 = vpop.f32.mrf.mxu0  ;;  %v91_v8 = vpop.f32.mrf.mxu1 }
  0x87   :  { %v87_v9 = vadd.f32 %v176_v6, %v86_v7  ;;  %v92_v10 = vadd.f32 %v176_v6, %v91_v8 }
  0x89   :  { %107 = vst.msk [vmem:[#allocation2] sm:$0xff] %vm106_vm1, %v87_v9 }
  0x8a   :  { %109 = vst.msk [vmem:[#allocation2 + $0x10] sm:$0xff] %vm106_vm1, %v92_v10 }
  0x8d   :  { %v96_v11 = vpop.f32.mrf.mxu2  ;;  %v101_v12 = vpop.f32.mrf.mxu3 }
  0x8e   :  { %v97_v13 = vadd.f32 %v176_v6, %v96_v11  ;;  %v102_v14 = vadd.f32 %v176_v6, %v101_v12  ;;  %v88_v15 = vpop.f32.mrf.mxu0  ;;  %v93_v16 = vpop.f32.mrf.mxu1 }
  0x8f   :  { %v89_v17 = vadd.f32 %v176_v6, %v88_v15  ;;  %v94_v18 = vadd.f32 %v176_v6, %v93_v16 }
  0x90   :  { %111 = vst.msk [vmem:[#allocation2 + $0x20] sm:$0xff] %vm106_vm1, %v97_v13 }
  0x91   :  { %113 = vst.msk [vmem:[#allocation2 + $0x30] sm:$0xff] %vm106_vm1, %v102_v14 }
  0x92   :  { %108 = vst.msk [vmem:[#allocation2 + $0x8] sm:$0xff] %vm106_vm1, %v89_v17 }
  0x93   :  { %110 = vst.msk [vmem:[#allocation2 + $0x18] sm:$0xff] %vm106_vm1, %v94_v18 }
  0x95   :  { %v98_v19 = vpop.f32.mrf.mxu2  ;;  %v103_v20 = vpop.f32.mrf.mxu3 }
  0x96   :  { %v99_v21 = vadd.f32 %v176_v6, %v98_v19  ;;  %v104_v22 = vadd.f32 %v176_v6, %v103_v20 }
  0x98   :  { %112 = vst.msk [vmem:[#allocation2 + $0x28] sm:$0xff] %vm106_vm1, %v99_v21 }
  0x99   :  { %114 = vst.msk [vmem:[#allocation2 + $0x38] sm:$0xff] %vm106_vm1, %v104_v22 }
  0x9a   :  { %127 = dma.vmem_to_hbm [thread:$0]  %s120_s2, 1024, %s122_s27, [#allocation3], %s204_s28, %s204_s28, %s205_s29  }
  0x9b   :  { %201 = dma.done.wait [#allocation3], 1024  }
  0x9c   :  { %202 = vsyncadd [#allocation3], 4294966272 }
  0x9d   :  { %132 = vsyncpa [#allocation3], 1 }

</bundles_post_ra>
